<compile_context>
chip_gen: v7x
topology: tpu7x:2x2x1
jax: 0.10.0
libtpu: 0.0.40
codegen_flags: <defaults>
</compile_context>

<pallas_src>
import functools

import jax
import jax.numpy as jnp
from jax.experimental import pallas as pl
from jax.experimental.pallas import tpu as pltpu

LANES = 128
SUBLANES = 8
TILE_ROWS = 2048  # (2048, 128) f32 block = 1 MiB per input per pipeline buffer.


def _tensorcores_per_chip():
    """2 for dual-TensorCore / megacore generations, else 1 (v5e/v6e)."""
    try:
        kind = jax.devices()[0].device_kind.lower()
    except Exception:  # pragma: no cover - defensive fallback
        return 1
    for tag in ("v4", "v5p", "7"):  # v4 / v5p megacore, v7x dual-TC
        if tag in kind:
            return 2
    return 1


def _silly_loss_kernel(p_ref, t_ref, abs_ref, sq_ref, *, rows, block_rows,
                       tiles_per_shard, num_full_tiles, need_mask):
    """Accumulate folded (8,128) partial sums of |pred-target| and (pred-target)^2.

    abs_ref / sq_ref are (8, 128) output blocks indexed only by the parallel
    shard axis, so they stay VMEM-resident across the reduction axis and act
    as the accumulators (zeroed at j == 0).
    """
    s = pl.program_id(0)
    j = pl.program_id(1)

    @pl.when(j == 0)
    def _():
        abs_ref[...] = jnp.zeros_like(abs_ref)
        sq_ref[...] = jnp.zeros_like(sq_ref)

    d = p_ref[...].astype(jnp.float32) - t_ref[...].astype(jnp.float32)

    def accumulate(dd):
        # (block_rows, 128) -> (block_rows//8, 8, 128): splits exactly along
        # native (8,128) tiles, so the reshape is a layout no-op and the
        # axis-0 reduce is elementwise vreg adds (pure VPU, no XLU).
        abs_ref[...] += jnp.sum(jnp.abs(dd).reshape(-1, SUBLANES, LANES), axis=0)
        sq_ref[...] += jnp.sum((dd * dd).reshape(-1, SUBLANES, LANES), axis=0)

    if need_mask:
        t_idx = s * tiles_per_shard + j

        # Steady state: full in-bounds tiles, no masking cost.
        @pl.when(t_idx < num_full_tiles)
        def _():
            accumulate(d)

        # Edge tile (ragged rows) and clamped duplicated shard tiles.
        @pl.when(t_idx >= num_full_tiles)
        def _():
            local_row = jax.lax.broadcasted_iota(
                jnp.int32, (block_rows, LANES), 0)
            mask = (t_idx * block_rows + local_row) < rows
            accumulate(jnp.where(mask, d, jnp.float32(0.0)))
    else:
        accumulate(d)


def _partial_sums(p2, t2):
    """Returns (sum |p - t|, sum (p - t)^2) over a (rows, 128) slab.

    rows is guaranteed by the caller to be a multiple of 8.
    """
    rows = p2.shape[0]
    block_rows = min(TILE_ROWS, rows)           # multiple of 8 either way
    num_tiles = -(-rows // block_rows)
    num_shards = _tensorcores_per_chip() if num_tiles >= 2 else 1
    num_shards = min(num_shards, num_tiles)
    tiles_per_shard = -(-num_tiles // num_shards)
    need_mask = (num_shards * tiles_per_shard * block_rows) != rows
    num_full_tiles = rows // block_rows

    kernel = functools.partial(
        _silly_loss_kernel,
        rows=rows,
        block_rows=block_rows,
        tiles_per_shard=tiles_per_shard,
        num_full_tiles=num_full_tiles,
        need_mask=need_mask,
    )

    def in_map(s, j):
        t_idx = s * tiles_per_shard + j
        return (jnp.minimum(t_idx, num_tiles - 1), 0)   # clamp duplicated tiles

    out_struct = jax.ShapeDtypeStruct((num_shards * SUBLANES, LANES),
                                      jnp.float32)

    itemsize = jnp.dtype(p2.dtype).itemsize
    block_bytes = block_rows * LANES * itemsize
    # 2 inputs x 2 pipeline buffers + accumulators/outputs + headroom;
    # explicit so v5e's 16 MiB scoped default never bites if blocks grow,
    # while staying well under v7x's 64 MiB physical VMEM.
    vmem_limit = int(min(48 << 20, max(16 << 20, 6 * block_bytes)))

    n_elems = rows * LANES
    cost = pl.CostEstimate(
        flops=5 * n_elems,
        transcendentals=0,
        bytes_accessed=2 * n_elems * itemsize
        + 2 * num_shards * SUBLANES * LANES * 4,
    )

    abs_part, sq_part = pl.pallas_call(
        kernel,
        out_shape=(out_struct, out_struct),
        grid_spec=pltpu.PrefetchScalarGridSpec(
            num_scalar_prefetch=0,
            grid=(num_shards, tiles_per_shard),
            in_specs=[
                pl.BlockSpec((block_rows, LANES), in_map),
                pl.BlockSpec((block_rows, LANES), in_map),
            ],
            out_specs=[
                pl.BlockSpec((SUBLANES, LANES), lambda s, j: (s, 0)),
                pl.BlockSpec((SUBLANES, LANES), lambda s, j: (s, 0)),
            ],
        ),
        compiler_params=pltpu.CompilerParams(
            dimension_semantics=("parallel", "arbitrary"),
            vmem_limit_bytes=vmem_limit,
        ),
        cost_estimate=cost,
    )(p2, t2)

    # Single tiny cross-lane reduction over (num_shards*8, 128), done in JAX.
    return jnp.sum(abs_part), jnp.sum(sq_part)


@functools.partial(jax.jit, static_argnames=("weights",))
def silly_loss(pred, target, weights=(1.0, 0.5)):
    """Weighted sum of L1 (mean) and MSE (mean) losses, fused in one kernel.

    Args:
      pred:   (B, C, H, W) predicted image (NCHW, as in PyTorch).
      target: (B, C, H, W) ground-truth image (same shape).
      weights: static per-loss weights (l1_weight, mse_weight).

    Returns:
      dict with 'l1', 'mse' and total 'loss' (all f32 scalars).
    """
    assert pred.shape == target.shape
    n = pred.size

    # Keep native dtype; reshape of a contiguous array is free.
    p = pred.reshape(-1)
    t = target.reshape(-1)

    # Align the streamed slab to 8*128 elements so its row count is a
    # multiple of 8 (required for the in-kernel (.., 8, 128) fold).
    align = SUBLANES * LANES
    n_main = (n // align) * align

    abs_sum = jnp.float32(0.0)
    sq_sum = jnp.float32(0.0)

    if n_main > 0:
        if n_main == n:
            p_main, t_main = p, t
        else:
            # TODO(synk): rare ragged case copies the aligned prefix; could be
            # folded into the in-kernel mask with a flat-index compare instead.
            p_main = jax.lax.slice(p, (0,), (n_main,))
            t_main = jax.lax.slice(t, (0,), (n_main,))
        a, q = _partial_sums(p_main.reshape(-1, LANES),
                             t_main.reshape(-1, LANES))
        abs_sum = abs_sum + a
        sq_sum = sq_sum + q

    if n_main != n:
        # < 1024 leftover elements: negligible; plain JAX.
        dp = (jax.lax.slice(p, (n_main,), (n,)).astype(jnp.float32)
              - jax.lax.slice(t, (n_main,), (n,)).astype(jnp.float32))
        abs_sum = abs_sum + jnp.sum(jnp.abs(dp))
        sq_sum = sq_sum + jnp.sum(dp * dp)

    inv_n = jnp.float32(1.0 / n)
    l1 = abs_sum * inv_n
    mse = sq_sum * inv_n
    loss = jnp.float32(weights[0]) * l1 + jnp.float32(weights[1]) * mse
    return {"l1": l1, "mse": mse, "loss": loss}


if __name__ == "__main__":
    key = jax.random.PRNGKey(0)
    k1, k2 = jax.random.split(key)
    # Small NCHW shapes: batch=2, channels=4, spatial=16x16.
    pred = jax.random.normal(k1, (2, 4, 16, 16), dtype=jnp.float32)
    target = jax.random.normal(k2, (2, 4, 16, 16), dtype=jnp.float32)

    out = silly_loss(pred, target)
    out = jax.tree_util.tree_map(jax.block_until_ready, out)

    # Reference check in plain JAX.
    d = pred.astype(jnp.float32) - target.astype(jnp.float32)
    l1_ref = jnp.mean(jnp.abs(d))
    mse_ref = jnp.mean(d * d)
    loss_ref = 1.0 * l1_ref + 0.5 * mse_ref
    assert jnp.allclose(out["l1"], l1_ref, rtol=1e-5, atol=1e-5)
    assert jnp.allclose(out["mse"], mse_ref, rtol=1e-5, atol=1e-5)
    assert jnp.allclose(out["loss"], loss_ref, rtol=1e-5, atol=1e-5)

    print("KERNEL_OK")
</pallas_src>

<mosaic_0001>
module attributes {stable_mosaic.version = 11 : i64} {
  func.func @_silly_loss_kernel(%arg0: i32, %arg1: i32, %arg2: memref<16x128xf32, #tpu.memory_space<vmem>>, %arg3: memref<16x128xf32, #tpu.memory_space<vmem>>, %arg4: memref<8x128xf32, #tpu.memory_space<vmem>>, %arg5: memref<8x128xf32, #tpu.memory_space<vmem>>) attributes {dimension_semantics = [#tpu.dimension_semantics<parallel>, #tpu.dimension_semantics<arbitrary>], iteration_bounds = array<i64: 1, 1>, scalar_prefetch = 0 : i64, scratch_operands = 0 : i64, tpu.core_type = #tpu.core_type<tc>, window_params = [{transform_indices = @transform_0, window_bounds = array<i64: 16, 128>}, {transform_indices = @transform_1, window_bounds = array<i64: 16, 128>}, {transform_indices = @transform_2, window_bounds = array<i64: 8, 128>}, {transform_indices = @transform_3, window_bounds = array<i64: 8, 128>}]} {
    %c0_i32 = arith.constant 0 : i32
    %0 = arith.cmpi eq, %arg1, %c0_i32 : i32
    %1 = arith.extui %0 : i1 to i32
    %c0_i32_0 = arith.constant 0 : i32
    %2 = arith.cmpi ne, %1, %c0_i32_0 : i32
    scf.if %2 {
      %cst_13 = arith.constant 0.000000e+00 : f32
      %18 = vector.broadcast %cst_13 : f32 to vector<8x128xf32>
      %c0_14 = arith.constant 0 : index
      %c0_15 = arith.constant 0 : index
      %19 = vector.load %arg4[%c0_14, %c0_15] : memref<8x128xf32, #tpu.memory_space<vmem>>, vector<8x128xf32>
      tpu.vector_store %arg4[%c0_14, %c0_15], %18 {strides = array<i32>} : memref<8x128xf32, #tpu.memory_space<vmem>>, vector<8x128xf32>,
      %cst_16 = arith.constant 0.000000e+00 : f32
      %20 = vector.broadcast %cst_16 : f32 to vector<8x128xf32>
      %c0_17 = arith.constant 0 : index
      %c0_18 = arith.constant 0 : index
      %21 = vector.load %arg5[%c0_17, %c0_18] : memref<8x128xf32, #tpu.memory_space<vmem>>, vector<8x128xf32>
      tpu.vector_store %arg5[%c0_17, %c0_18], %20 {strides = array<i32>} : memref<8x128xf32, #tpu.memory_space<vmem>>, vector<8x128xf32>,
    } else {
    }
    %c0 = arith.constant 0 : index
    %c0_1 = arith.constant 0 : index
    %3 = vector.load %arg2[%c0, %c0_1] : memref<16x128xf32, #tpu.memory_space<vmem>>, vector<16x128xf32>
    %c0_2 = arith.constant 0 : index
    %c0_3 = arith.constant 0 : index
    %4 = vector.load %arg3[%c0_2, %c0_3] : memref<16x128xf32, #tpu.memory_space<vmem>>, vector<16x128xf32>
    %5 = arith.subf %3, %4 : vector<16x128xf32>
    %c0_4 = arith.constant 0 : index
    %c0_5 = arith.constant 0 : index
    %6 = vector.load %arg4[%c0_4, %c0_5] : memref<8x128xf32, #tpu.memory_space<vmem>>, vector<8x128xf32>
    %7 = math.absf %5 : vector<16x128xf32>
    %8 = vector.shape_cast %7 : vector<16x128xf32> to vector<2x8x128xf32>
    %cst = arith.constant dense<0.000000e+00> : vector<8x128xf32>
    %9 = vector.multi_reduction <add>, %8, %cst [0] : vector<2x8x128xf32> to vector<8x128xf32>
    %10 = arith.addf %6, %9 : vector<8x128xf32>
    %c0_6 = arith.constant 0 : index
    %c0_7 = arith.constant 0 : index
    %11 = vector.load %arg4[%c0_6, %c0_7] : memref<8x128xf32, #tpu.memory_space<vmem>>, vector<8x128xf32>
    tpu.vector_store %arg4[%c0_6, %c0_7], %10 {strides = array<i32>} : memref<8x128xf32, #tpu.memory_space<vmem>>, vector<8x128xf32>,
    %c0_8 = arith.constant 0 : index
    %c0_9 = arith.constant 0 : index
    %12 = vector.load %arg5[%c0_8, %c0_9] : memref<8x128xf32, #tpu.memory_space<vmem>>, vector<8x128xf32>
    %13 = arith.mulf %5, %5 : vector<16x128xf32>
    %14 = vector.shape_cast %13 : vector<16x128xf32> to vector<2x8x128xf32>
    %cst_10 = arith.constant dense<0.000000e+00> : vector<8x128xf32>
    %15 = vector.multi_reduction <add>, %14, %cst_10 [0] : vector<2x8x128xf32> to vector<8x128xf32>
    %16 = arith.addf %12, %15 : vector<8x128xf32>
    %c0_11 = arith.constant 0 : index
    %c0_12 = arith.constant 0 : index
    %17 = vector.load %arg5[%c0_11, %c0_12] : memref<8x128xf32, #tpu.memory_space<vmem>>, vector<8x128xf32>
    tpu.vector_store %arg5[%c0_11, %c0_12], %16 {strides = array<i32>} : memref<8x128xf32, #tpu.memory_space<vmem>>, vector<8x128xf32>,
    return
  }
  func.func @transform_0(%arg0: i32, %arg1: i32) -> (i32, i32) {
    %c1_i32 = arith.constant 1 : i32
    %0 = arith.muli %arg0, %c1_i32 : i32
    %1 = arith.addi %0, %arg1 : i32
    %c0_i32 = arith.constant 0 : i32
    %2 = arith.minsi %1, %c0_i32 : i32
    %c0_i32_0 = arith.constant 0 : i32
    %c0_i32_1 = arith.constant 0 : i32
    return %2, %c0_i32_0 : i32, i32
  }
  func.func @transform_1(%arg0: i32, %arg1: i32) -> (i32, i32) {
    %c1_i32 = arith.constant 1 : i32
    %0 = arith.muli %arg0, %c1_i32 : i32
    %1 = arith.addi %0, %arg1 : i32
    %c0_i32 = arith.constant 0 : i32
    %2 = arith.minsi %1, %c0_i32 : i32
    %c0_i32_0 = arith.constant 0 : i32
    %c0_i32_1 = arith.constant 0 : i32
    return %2, %c0_i32_0 : i32, i32
  }
  func.func @transform_2(%arg0: i32, %arg1: i32) -> (i32, i32) {
    %c0_i32 = arith.constant 0 : i32
    %c0_i32_0 = arith.constant 0 : i32
    return %arg0, %c0_i32 : i32, i32
  }
  func.func @transform_3(%arg0: i32, %arg1: i32) -> (i32, i32) {
    %c0_i32 = arith.constant 0 : i32
    %c0_i32_0 = arith.constant 0 : i32
    return %arg0, %c0_i32 : i32, i32
  }
}

</mosaic_0001>

<bundles_post_ra>
// kernel: silly_loss.1
= control target key start
LH: loop header
LB: loop body
LE: loop exit
PB: predicated region body
PF: predicated region fallthrough
CT: control target
= control target key end

     0   :  { %s160_s0 = inlined_call_operand.vmem [shape: f32[16,128], index: 0, kind: input, shape index: {}]   ;;  %s161_s1 = inlined_call_operand.vmem [shape: f32[16,128], index: 1, kind: input, shape index: {}]   ;;  %s162_s2 = inlined_call_operand.vmem [shape: f32[8,128], index: 2, kind: output, shape index: {0}]   ;;  %s163_s3 = inlined_call_operand.vmem [shape: f32[8,128], index: 3, kind: output, shape index: {1}]  }
   0x1   :  { %v83_v0 = vld [vmem:[%s160_s0] sm:$0xff]  ;;  %v84_v1 = vld [vmem:[%s160_s0 + $0x8] sm:$0xff] }
   0x2   :  { %v85_v2 = vld [vmem:[%s161_s1] sm:$0xff]  ;;  %v86_v3 = vld [vmem:[%s161_s1 + $0x8] sm:$0xff] }
   0x3   :  { %v87_v4 = vsub.f32 %v83_v0, %v85_v2  ;;  %v88_v5 = vsub.f32 %v84_v1, %v86_v3 }
   0x5   :  { %v90_v6 = vand.u32 2147483647, %v87_v4  ;;  %v96_v7 = vmul.f32 %v87_v4, %v87_v4  ;;  %v91_v8 = vand.u32 2147483647, %v88_v5  ;;  %v97_v9 = vmul.f32 %v88_v5, %v88_v5 }
   0x7   :  { %v92_v10 = vadd.f32 %v91_v8, %v90_v6  ;;  %v98_v11 = vadd.f32 %v97_v9, %v96_v7 }
   0x9   :  { %94 = vst [vmem:[%s162_s2] sm:$0xff] %v92_v10  ;;  %100 = vst [vmem:[%s163_s3] sm:$0xff] %v98_v11 }

</bundles_post_ra>
